<compile_context>
chip_gen: v7x
topology: tpu7x:2x2x1
jax: 0.10.0
libtpu: 0.0.40
codegen_flags: <defaults>
</compile_context>

<pallas_src>
import functools

import jax
import jax.numpy as jnp
from jax.experimental import pallas as pl
from jax.experimental.pallas import tpu as pltpu


def _multi_embed_kernel(x_ref, *refs, num_layers: int):
    """refs = (w0, b0, w1, b1, ..., o_ref); one grid step = one object type."""
    o_ref = refs[-1]
    wb = refs[:-1]

    h = x_ref[0]                                        # (M, F_max), M = B*S_max
    for l in range(num_layers):                         # static layer loop
        w = wb[2 * l][0]                                # (in_l, out_l)
        b = wb[2 * l + 1][0]                            # (1,   out_l)
        h = jnp.dot(h, w, preferred_element_type=jnp.float32) + b
        if l < num_layers - 1:
            h = jnp.maximum(h, 0.0)                     # hidden_activation = ReLU
    o_ref[0] = h.astype(o_ref.dtype)


def multi_embeddings(xs, params_per_type):
    """xs: list of (B, S_i, F_i). params_per_type: list (len T) of [(w, b), ...].
    Returns (B, sum_i S_i, E) — matches MultiEmbeddings.forward."""
    T = len(xs)
    assert T == len(params_per_type)
    B = xs[0].shape[0]
    S_list = [int(x.shape[1]) for x in xs]
    F_list = [int(x.shape[2]) for x in xs]
    S_max, F_max = max(S_list), max(F_list)
    num_layers = len(params_per_type[0])
    layer_out = [params_per_type[0][l][0].shape[1] for l in range(num_layers)]
    E = layer_out[-1]
    M = B * S_max                                       # folded row dim for the MXU

    # ---- wrapper-side layout plumbing (keep the kernel lane/row dense) -------
    x_stack = jnp.stack([
        jnp.pad(xs[t], ((0, 0), (0, S_max - S_list[t]), (0, F_max - F_list[t]))
                ).reshape(M, F_max)
        for t in range(T)
    ])                                                  # (T, M, F_max)

    flat_params, in_specs = [], [pl.BlockSpec((1, M, F_max), lambda t: (t, 0, 0))]
    for l in range(num_layers):
        ws, bs = [], []
        for t in range(T):
            w, b = params_per_type[t][l]
            if l == 0 and w.shape[0] < F_max:           # zero-pad extra feature rows
                w = jnp.pad(w, ((0, F_max - w.shape[0]), (0, 0)))
            ws.append(w)
            bs.append(b.reshape(1, -1))
        w_st = jnp.stack(ws)                            # (T, in_l, out_l)
        b_st = jnp.stack(bs)                            # (T, 1,   out_l)
        flat_params += [w_st, b_st]
        in_specs.append(pl.BlockSpec((1,) + w_st.shape[1:], lambda t: (t, 0, 0)))
        in_specs.append(pl.BlockSpec((1,) + b_st.shape[1:], lambda t: (t, 0, 0)))

    kernel = functools.partial(_multi_embed_kernel, num_layers=num_layers)

    out_stack = pl.pallas_call(
        kernel,
        out_shape=jax.ShapeDtypeStruct((T, M, E), jnp.float32),
        grid_spec=pltpu.PrefetchScalarGridSpec(
            num_scalar_prefetch=0,
            grid=(T,),
            in_specs=in_specs,
            out_specs=pl.BlockSpec((1, M, E), lambda t: (t, 0, 0)),
        ),
        compiler_params=pltpu.CompilerParams(
            dimension_semantics=("parallel",),          # types independent (v7x 2-TC)
        ),
    )(x_stack, *flat_params)                            # (T, M, E)

    # ---- un-pad and concatenate along the sequence dim (PyTorch dim=1) -------
    out_stack = out_stack.reshape(T, B, S_max, E)
    pieces = [out_stack[t, :, :S_list[t], :] for t in range(T)]
    return jnp.concatenate(pieces, axis=1)              # (B, sum S_i, E)


def _reference(xs, params_per_type):
    """Pure-JAX reference matching the PyTorch MultiEmbeddings forward."""
    outs = []
    for t, x in enumerate(xs):
        h = x
        nl = len(params_per_type[t])
        for l, (w, b) in enumerate(params_per_type[t]):
            h = h @ w + b
            if l < nl - 1:
                h = jnp.maximum(h, 0.0)
        outs.append(h)
    return jnp.concatenate(outs, axis=1)


def make_params(key, features_per_type, embed_dims):
    """One MLP per DISTINCT feature tuple; identical tuples share weights."""
    distinct = {}
    params_per_type = []
    for feats in features_per_type:
        feats = tuple(feats)
        if feats not in distinct:
            dims = [len(feats)] + list(embed_dims)
            layers = []
            for l in range(len(dims) - 1):
                key, k1, k2 = jax.random.split(key, 3)
                s = 1.0 / (dims[l] ** 0.5)
                w = jax.random.uniform(k1, (dims[l], dims[l + 1]), jnp.float32, -s, s)
                b = jax.random.uniform(k2, (dims[l + 1],), jnp.float32, -s, s)
                layers.append((w, b))
            distinct[feats] = layers
        params_per_type.append(distinct[feats])
    return params_per_type


if __name__ == "__main__":
    # Small deterministic example: 3 object types, types 0 and 2 share features
    # (and therefore share the same embedding MLP, as in the PyTorch module).
    features_per_type = [(0, 1, 2, 3), (0, 1, 2), (0, 1, 2, 3)]   # F = [4, 3, 4]
    embed_dims = [16, 32]                                          # hidden 16 -> E=32
    B = 2
    S_list = [6, 4, 5]

    key = jax.random.PRNGKey(0)
    kp, *kxs = jax.random.split(key, 1 + len(features_per_type))
    params_per_type = make_params(kp, features_per_type, embed_dims)
    xs = [
        jax.random.normal(kxs[t], (B, S_list[t], len(features_per_type[t])),
                          jnp.float32)
        for t in range(len(features_per_type))
    ]

    out = multi_embeddings(xs, params_per_type)
    out = jax.block_until_ready(out)

    ref = _reference(xs, params_per_type)
    assert out.shape == (B, sum(S_list), embed_dims[-1]), out.shape
    assert jnp.allclose(out, ref, atol=1e-5, rtol=1e-5), (
        f"max err {jnp.max(jnp.abs(out - ref))}")

    # TODO(synk): MLP's optional mask / batch_norm / normalize / dropout>0 paths
    # are not exercised (defaults in this module's usage); ReLU is used as the
    # hidden_activation for a nontrivial MLP.
    print("KERNEL_OK")
</pallas_src>

<mosaic_0001>
module attributes {stable_mosaic.version = 11 : i64} {
  func.func @_multi_embed_kernel(%arg0: i32, %arg1: memref<1x12x4xf32, #tpu.memory_space<vmem>>, %arg2: memref<1x4x16xf32, #tpu.memory_space<vmem>>, %arg3: memref<1x1x16xf32, #tpu.memory_space<vmem>>, %arg4: memref<1x16x32xf32, #tpu.memory_space<vmem>>, %arg5: memref<1x1x32xf32, #tpu.memory_space<vmem>>, %arg6: memref<1x12x32xf32, #tpu.memory_space<vmem>>) attributes {dimension_semantics = [#tpu.dimension_semantics<parallel>], iteration_bounds = array<i64: 3>, scalar_prefetch = 0 : i64, scratch_operands = 0 : i64, tpu.core_type = #tpu.core_type<tc>, window_params = [{transform_indices = @transform_0, window_bounds = array<i64: 1, 12, 4>}, {transform_indices = @transform_1, window_bounds = array<i64: 1, 4, 16>}, {transform_indices = @transform_2, window_bounds = array<i64: 1, 1, 16>}, {transform_indices = @transform_3, window_bounds = array<i64: 1, 16, 32>}, {transform_indices = @transform_4, window_bounds = array<i64: 1, 1, 32>}, {transform_indices = @transform_5, window_bounds = array<i64: 1, 12, 32>}]} {
    %c0 = arith.constant 0 : index
    %c0_0 = arith.constant 0 : index
    %c0_1 = arith.constant 0 : index
    %0 = vector.load %arg1[%c0, %c0_0, %c0_1] : memref<1x12x4xf32, #tpu.memory_space<vmem>>, vector<1x12x4xf32>
    %1 = vector.shape_cast %0 : vector<1x12x4xf32> to vector<12x4xf32>
    %c0_2 = arith.constant 0 : index
    %c0_3 = arith.constant 0 : index
    %c0_4 = arith.constant 0 : index
    %2 = vector.load %arg2[%c0_2, %c0_3, %c0_4] : memref<1x4x16xf32, #tpu.memory_space<vmem>>, vector<1x4x16xf32>
    %3 = vector.shape_cast %2 : vector<1x4x16xf32> to vector<4x16xf32>
    %c0_5 = arith.constant 0 : index
    %c0_6 = arith.constant 0 : index
    %c0_7 = arith.constant 0 : index
    %4 = vector.load %arg3[%c0_5, %c0_6, %c0_7] : memref<1x1x16xf32, #tpu.memory_space<vmem>>, vector<1x1x16xf32>
    %5 = vector.shape_cast %4 : vector<1x1x16xf32> to vector<1x16xf32>
    %cst = arith.constant dense<0.000000e+00> : vector<12x16xf32>
    %6 = tpu.matmul %1, %3, %cst {dimension_numbers = #tpu.dot_dimension_numbers<[1], [0], [0], [1], [0, 0, 1, 1], [], []>} : vector<12x4xf32>, vector<4x16xf32>, vector<12x16xf32> -> vector<12x16xf32>
    %7 = vector.broadcast %5 : vector<1x16xf32> to vector<12x16xf32>
    %8 = arith.addf %6, %7 : vector<12x16xf32>
    %cst_8 = arith.constant 0.000000e+00 : f32
    %9 = vector.broadcast %cst_8 : f32 to vector<12x16xf32>
    %10 = arith.maximumf %8, %9 : vector<12x16xf32>
    %c0_9 = arith.constant 0 : index
    %c0_10 = arith.constant 0 : index
    %c0_11 = arith.constant 0 : index
    %11 = vector.load %arg4[%c0_9, %c0_10, %c0_11] : memref<1x16x32xf32, #tpu.memory_space<vmem>>, vector<1x16x32xf32>
    %12 = vector.shape_cast %11 : vector<1x16x32xf32> to vector<16x32xf32>
    %c0_12 = arith.constant 0 : index
    %c0_13 = arith.constant 0 : index
    %c0_14 = arith.constant 0 : index
    %13 = vector.load %arg5[%c0_12, %c0_13, %c0_14] : memref<1x1x32xf32, #tpu.memory_space<vmem>>, vector<1x1x32xf32>
    %14 = vector.shape_cast %13 : vector<1x1x32xf32> to vector<1x32xf32>
    %cst_15 = arith.constant dense<0.000000e+00> : vector<12x32xf32>
    %15 = tpu.matmul %10, %12, %cst_15 {dimension_numbers = #tpu.dot_dimension_numbers<[1], [0], [0], [1], [0, 0, 1, 1], [], []>} : vector<12x16xf32>, vector<16x32xf32>, vector<12x32xf32> -> vector<12x32xf32>
    %16 = vector.broadcast %14 : vector<1x32xf32> to vector<12x32xf32>
    %17 = arith.addf %15, %16 : vector<12x32xf32>
    %c0_16 = arith.constant 0 : index
    %c0_17 = arith.constant 0 : index
    %c0_18 = arith.constant 0 : index
    %18 = vector.load %arg6[%c0_16, %c0_17, %c0_18] : memref<1x12x32xf32, #tpu.memory_space<vmem>>, vector<1x12x32xf32>
    %19 = vector.shape_cast %18 : vector<1x12x32xf32> to vector<12x32xf32>
    %20 = vector.shape_cast %17 : vector<12x32xf32> to vector<1x12x32xf32>
    tpu.vector_store %arg6[%c0_16, %c0_17, %c0_18], %20 {strides = array<i32>} : memref<1x12x32xf32, #tpu.memory_space<vmem>>, vector<1x12x32xf32>,
    return
  }
  func.func @transform_0(%arg0: i32) -> (i32, i32, i32) {
    %c0_i32 = arith.constant 0 : i32
    %c0_i32_0 = arith.constant 0 : i32
    %c0_i32_1 = arith.constant 0 : i32
    return %arg0, %c0_i32, %c0_i32_0 : i32, i32, i32
  }
  func.func @transform_1(%arg0: i32) -> (i32, i32, i32) {
    %c0_i32 = arith.constant 0 : i32
    %c0_i32_0 = arith.constant 0 : i32
    %c0_i32_1 = arith.constant 0 : i32
    return %arg0, %c0_i32, %c0_i32_0 : i32, i32, i32
  }
  func.func @transform_2(%arg0: i32) -> (i32, i32, i32) {
    %c0_i32 = arith.constant 0 : i32
    %c0_i32_0 = arith.constant 0 : i32
    %c0_i32_1 = arith.constant 0 : i32
    return %arg0, %c0_i32, %c0_i32_0 : i32, i32, i32
  }
  func.func @transform_3(%arg0: i32) -> (i32, i32, i32) {
    %c0_i32 = arith.constant 0 : i32
    %c0_i32_0 = arith.constant 0 : i32
    %c0_i32_1 = arith.constant 0 : i32
    return %arg0, %c0_i32, %c0_i32_0 : i32, i32, i32
  }
  func.func @transform_4(%arg0: i32) -> (i32, i32, i32) {
    %c0_i32 = arith.constant 0 : i32
    %c0_i32_0 = arith.constant 0 : i32
    %c0_i32_1 = arith.constant 0 : i32
    return %arg0, %c0_i32, %c0_i32_0 : i32, i32, i32
  }
  func.func @transform_5(%arg0: i32) -> (i32, i32, i32) {
    %c0_i32 = arith.constant 0 : i32
    %c0_i32_0 = arith.constant 0 : i32
    %c0_i32_1 = arith.constant 0 : i32
    return %arg0, %c0_i32, %c0_i32_0 : i32, i32, i32
  }
}

</mosaic_0001>

<bundles_post_ra>
// kernel: tpu_custom_call.1
= control target key start
LH: loop header
LB: loop body
LE: loop exit
PB: predicated region body
PF: predicated region fallthrough
CT: control target
= control target key end

     0   :  { %10 = vsyncpa [#allocation3], 0  ;;  %s906_s0 = inlined_call_operand.vmem [shape: f32[3,12,4], index: 0, kind: input, shape index: {}]   ;;  %s907_s1 = inlined_call_operand.vmem [shape: f32[3,4,16], index: 1, kind: input, shape index: {}]   ;;  %s908_s2 = inlined_call_operand.vmem [shape: f32[3,1,16], index: 2, kind: input, shape index: {}]   ;;  %s909_s3 = inlined_call_operand.vmem [shape: f32[3,16,32], index: 3, kind: input, shape index: {}]   ;;  %s910_s4 = inlined_call_operand.vmem [shape: f32[3,1,32], index: 4, kind: input, shape index: {}]   ;;  %s911_s5 = inlined_call_operand.hbm [shape: f32[3,12,32], index: 5, kind: output, shape index: {}]  }
   0x1   :  { %12 = vsyncpa [#allocation3 + $0x1], 0  ;;  %s785_s18 = smov 0   ;;  %s787_s19 = smov 0  }
   0x2   :  { %s789_s20 = smov 0   ;;  %s791_s21 = smov 0  }
   0x3 LB: > { %s806_s22 = sadd.s32 4294967295, %s750_s21   ;;  %s599_s23 = sadd.s32 4294967294, %s750_s21   ;;  %s750_s21 = sphi %s791_s21, %s917_s21   ;;  %s746_s20 = sphi %s789_s20, %s916_s20   ;;  %s742_s19 = sphi %s787_s19, %s915_s19   ;;  %s738_s18 = sphi %s785_s18, %s914_s18  }
   0x4   : > { %s810_s24 = sadd.s32 1, %s750_s21   ;;  %s155_s25 = sadd.s32 1, %s746_s20 }
   0x5   : > { %s152_s26 = ssub.s32 %s750_s21, %s810_s24  ;;  %p165_p0 = scmp.ne.s32.totalorder %s746_s20, %s742_s19 }
   0x6   : > { %p153_p1 = scmp.eq.s32.totalorder %s152_s26, 0  ;;  %p166_p2 = scmp.eq.s32.totalorder %s806_s22, 2 }
   0x7   : > { %p171_p3 = scmp.ne.s32.totalorder %s742_s19, %s738_s18  ;;  %p172_p4 = scmp.eq.s32.totalorder %s599_s23, 2 }
   0x8   : > { %s821_s27 = scalar_select %p153_p1, %s746_s20, %s155_s25  }
   0x9   : > { %p823_p5 = por %p166_p2, %p165_p0  ;;  %p827_p6 = por %p172_p4, %p171_p3 }
   0xa   : > { %p602_p7 = scmp.ge.s32.totalorder %s750_s21, 1  ;;  %p225_p8 = scmp.lt.s32.totalorder %s750_s21, 4 }
   0xc   : > { %p226_p9 = pnand %p602_p7, %p225_p8 }
   0xd   : > { %p268_p10 = scmp.lt.s32.totalorder (!%p226_p9), %s806_s22, 2  ;;  %vm305_vm0 = vcmask (!%p226_p9), 1043456   ;;  %vm298_vm1 = vcmask (!%p226_p9), 31744   ;;  %vm395_vm2 = vcmask (!%p226_p9), 130048   ;;  %s265_s26 = sand.u32 (!%p226_p9), 1, %s742_s19   ;;  %vm479_vm3 = vcmask (!%p226_p9), 257024  }
   0xe   : > { %229 = sbr.rel (%p226_p9) target bundleno = 476 (0x1dc), region = 40  ;;  %s623_s12 = sshll.u32 (!%p226_p9), %s806_s22, 8  ;;  %vm477_vm4 = vcmask (!%p226_p9), 261120  }
   0xf   : > { %s863_s15 = scalar_lea.hbm (!%p226_p9), %s911_s5, %s623_s12 }
  0x15   : > { %s835_s30 = scalar_select %p268_p10, %s806_s22, 2 }
  0x17   : > { %s606_s6 = sshll.u32 %s835_s30, 2  ;;  %s621_s7 = sshll.u32 %s835_s30, 4 }
  0x18   : > { %s276_s10 = scalar_lea.vmem %s907_s1, %s606_s6  ;;  %s272_s13 = scalar_lea.vmem %s906_s0, %s621_s7 }
  0x19   : > { %v290_v0 = vld [vmem:[%s276_s10] sm:$0xf]  ;;  %v289_v2 = vld [vmem:[%s272_s13 + $0x8] sm:$0xf]  ;;  %s284_s16 = scalar_lea.vmem %s909_s3, %s621_s7  ;;  %s279_s25 = scalar_lea.vmem %s908_s2, %s835_s30 }
  0x1a   : > { %v288_v1 = vld [vmem:[%s272_s13] sm:$0xff]  ;;  %631 = vmatprep.subr.msk.mxu0 %vm305_vm0, %v290_v0  ;;  %v387_v4 = vld [vmem:[%s284_s16 + $0x8] sm:$0xff]  ;;  %s603_s6 = sshll.u32 %s265_s26, 4  ;;  %s287_s9 = scalar_lea.vmem %s910_s4, %s835_s30 }
  0x1b   : > { %633 = vmatprep.mubr.msk.f32.mxu0 %vm298_vm1, %v288_v1  ;;  %632 = vmatpush3.msk.msra.mxu0 %vm305_vm0, %v290_v0  ;;  %v386_v3 = vld [vmem:[%s284_s16] sm:$0xff]  ;;  %s267_s10 = scalar_lea.vmem [#allocation2], %s603_s6  ;;  %s865_s30 = scalar_lea.sflag [#allocation3], %s265_s26 }
  0x1c   : > { %634 = vmatmul.mubr.msk.f32.vlgmr.msra.gmra.mrb[0].mxu0 %vm298_vm1, %v289_v2  ;;  %v643_v5 = vpack.c.bf16 %v387_v4, %v386_v3  ;;  %v609_v6 = vld [vmem:[%s279_s25] ss:$0 sm:$0xff]  ;;  %s495_s11 = sshll.u32 %s267_s10, 4  ;;  %s752_s16 = smov [#allocation2]   ;;  %s858_s11 = int_to_ptr.vmem [resolvable:$true] %s495_s11 }
  0x1d   : > { %v613_v13 = vld [vmem:[%s287_s9] ss:$0 sm:$0xff]  ;;  %s688_s22 = scalar_lea.vmem %s858_s11, 256  ;;  %s692_s17 = sshll.u32 %s752_s16, 4  ;;  %s693_s17 = int_to_ptr.vmem [resolvable:$false] %s692_s17 }
  0x1e   : > { %644 = vmatprep.subr.bf16.mxu1 %v643_v5  ;;  %p689_p11 = scmp.ne.s32.totalorder %s858_s11, %s688_s22  ;;  %s694_s23 = scalar_lea.vmem %s693_s17, 512 }
  0x1f   : > { %646 = vmatpush3.bf16.msra.mxu1 %v643_v5  ;;  %p695_p0 = scmp.lt.s32.totalorder %s858_s11, %s693_s17  ;;  %p696_p1 = scmp.lt.s32.totalorder %s694_s23, %s688_s22 }
  0x20   : > { %p690_p12 = pnand %p689_p11, %p823_p5 }
  0x21   : > { %p697_p2 = por %p696_p1, %p695_p0 }
  0x22   : > { %p691_p13 = pneg %p690_p12 }
  0x24   : > { %p698_p3 = pnand %p697_p2, %p691_p13 }
  0xef   : > { %v635_v7 = vpop.f32.mrb[0].mxu0 }
  0xf0   : > { %v381_v8 = vadd.f32 %v635_v7, %v609_v6  ;;  %v375_v9 = vpop.f32.mrb[1].mxu0 }
  0xf1   : > { %v376_v10 = vadd.f32 %v609_v6, %v375_v9 }
  0xf2   : > { %v385_v12 = vmax.f32 %v381_v8, 0.0 }
  0xf3   : > { %v384_v11 = vmax.f32 %v376_v10, 0.0 }
  0xf5   : > { %640 = vmatprep.mubr.msk.f32.mxu1 %vm395_vm2, %v384_v11 }
  0xf6   : > { %641 = vmatmul.mubr.msk.f32.vlgmr.msra.gmra.mrb[0].mxu1 %vm395_vm2, %v385_v12 }
 0x1c9   : > { %v642_v14 = vpop.f32.mrb[0].mxu1 }
 0x1ca   : > { %v474_v15 = vadd.f32 %v642_v14, %v613_v13  ;;  %v468_v16 = vpop.f32.mrb[1].mxu1 }
 0x1cb   : > { %v469_v17 = vadd.f32 %v613_v13, %v468_v16 }
 0x1cc   : > { %480 = vst.msk [vmem:[%s267_s10 + $0x8] sm:$0xf] %vm479_vm3, %v474_v15 }
 0x1cd   : > { %478 = vst.msk [vmem:[%s267_s10] sm:$0xff] %vm477_vm4, %v469_v17 }
 0x1ce   : > { %701 = shalt.err (!%p698_p3)
}
 0x1cf   : > { %s702_s25 = scalar_lea.hbm %s863_s15, 256  ;;  %s706_s7 = scalar_lea.hbm %s911_s5, 768 }
 0x1d0   : > { %p703_p4 = scmp.ne.s32.totalorder %s863_s15, %s702_s25  ;;  %p707_p9 = scmp.lt.u32.totalorder %s863_s15, %s911_s5 }
 0x1d1   : > { %p708_p10 = scmp.lt.u32.totalorder %s706_s7, %s702_s25  ;;  %p710_p12 = scmp.lt.u32.totalorder %s702_s25, %s863_s15 }
 0x1d2   : > { %p704_p7 = pnand %p703_p4, %p823_p5 }
 0x1d3   : > { %p709_p11 = por %p708_p10, %p707_p9 }
 0x1d4   : > { %p705_p8 = pneg %p704_p7 }
 0x1d5   : > { %p711_p13 = por %p710_p12, %p709_p11 }
 0x1d7   : > { %p712_p0 = pnand %p711_p13, %p705_p8 }
 0x1d9   : > { %715 = shalt.err (!%p712_p0)
}
 0x1da   : > { %s753_s10 = smov 128   ;;  %s754_s12 = smov 8  }
 0x1db   : > { %647 = dma.vmem_to_hbm [thread:$0]  (%p823_p5), %s858_s11, 256, %s863_s15, %s865_s30, %s753_s10, %s753_s10, %s754_s12  }
 0x1dc PF: > { %p653_p1 = scmp.ge.s32.totalorder %s750_s21, 2  ;;  %s510_s13 = sand.u32 1, %s738_s18  }
 0x1dd   : > { %s511_s14 = scalar_lea.sflag [#allocation3], %s510_s13 }
 0x1de   : > { %p650_p2 = pnand %p653_p1, %p827_p6 }
 0x1e0   : > { %733 = dma.done.wait (!%p650_p2), %s511_s14, 256  }
 0x1e1   : > { %735 = vsyncadd (!%p650_p2), %s511_s14, 4294967040  ;;  %p15_p3 = scmp.ge.s32.totalorder %s810_s24, 5   ;;  %s914_s18 = smov %s742_s19 }
 0x1e2   : > { %s915_s19 = smov %s746_s20  ;;  %s916_s20 = smov %s821_s27 }
 0x1e3   : > { %s917_s21 = smov %s810_s24  ;;  %17 = sbr.rel (!%p15_p3) target bundleno = 3 (0x3), region = 87 }
 0x1ea   :  { %516 = vsyncpa [#allocation3], 1 }
 0x1eb   :  { %518 = vsyncpa [#allocation3 + $0x1], 1 }

</bundles_post_ra>
